<compile_context>
chip_gen: v6e
topology: v6e:2x2x1
jax: 0.10.0
libtpu: 0.0.40
codegen_flags: <defaults>
</compile_context>

<pallas_src>
import jax
import jax.numpy as jnp
from jax.experimental import pallas as pl

# ----- module hyper-parameters (SemiCausalConvTranspose.__init__ args) -----
C_IN, C_OUT = 4, 4
KF, KT = 3, 2            # freq_kernel_size, time_kernel_size
S_F, S_T = 2, 1          # stride (freq, time); DCCRN decoder uses time stride 1
DIL = 1                  # dilation
PAD_F = (KF - 1) * DIL // 2
PAD_T = (KT - 1) * DIL // 2
CHOMP = (KT - 1) * DIL
OUT_PAD_F, OUT_PAD_T = 1, 0          # output_padding=(1, 0)
assert S_T == 1, "kernel assumes time stride 1 (as in DCCRN)"

# ----- demo input shape (PyTorch NCHW): [B, C_in, F, T] -----
B, F_IN, T_IN = 2, 16, 8

# ----- derived output shapes -----
F_OUT = (F_IN - 1) * S_F - 2 * PAD_F + DIL * (KF - 1) + OUT_PAD_F + 1   # 32
T_CONV = (T_IN - 1) * S_T - 2 * PAD_T + DIL * (KT - 1) + OUT_PAD_T + 1  # 9
T_OUT = T_CONV - CHOMP                                                  # 8 (== T_IN)
T_EXT = T_IN + CHOMP - PAD_T       # time frames the kernel reads (1 zero look-ahead)

# padding of the equivalent stride-1 dilated conv (used only by the reference)
LO_F = DIL * (KF - 1) - PAD_F
HI_F = LO_F + OUT_PAD_F
LO_T = DIL * (KT - 1) - PAD_T
HI_T = LO_T + OUT_PAD_T


def _deconv_kernel(x_ref, w_ref, b_ref, o_ref):
    # x_ref: [B, T_EXT, C_IN*F_IN]        time-padded activations (chan*freq on lanes)
    # w_ref: [KT, C_IN*F_IN, C_OUT*F_OUT] per-time-tap polyphase weight matrices
    # b_ref: [1, C_OUT*F_OUT]             bias pre-broadcast over freq lanes
    # o_ref: [B*T_OUT, C_OUT*F_OUT]       lane-dense (128-wide) output
    acc = None
    for kt in range(KT):                                  # unrolled (KT == 2)
        off = CHOMP + PAD_T - kt * DIL                    # static per-tap time offset
        xs = x_ref[:, off:off + T_OUT, :].reshape(B * T_OUT, C_IN * F_IN)
        part = jnp.dot(xs, w_ref[kt], preferred_element_type=jnp.float32)
        acc = part if acc is None else acc + part
    o_ref[...] = (acc + b_ref[...]).astype(o_ref.dtype)   # bias added exactly once


@jax.jit
def semi_causal_conv_transpose(x, wt, bias):
    """x: [B, C_in, F, T] (NCHW); wt: [C_in, C_out, kF, kT]; bias: [C_out]."""
    # --- one-time parameter prep: fold freq polyphase + kernel flip into W[kt] ---
    fi = jnp.arange(F_IN)
    kf = jnp.arange(KF)
    fo = S_F * fi[:, None] - PAD_F + DIL * kf[None, :]              # [F_IN, KF]
    onehot = (fo[:, :, None] == jnp.arange(F_OUT)[None, None, :])   # [F_IN, KF, F_OUT]
    onehot = onehot.astype(wt.dtype)        # out-of-range fo never matches -> masked
    # w_poly[kt, ci*F_IN+fi, co*F_OUT+fo] = wt[ci, co, kf, kt] with fo = S_F*fi-PAD_F+DIL*kf
    w_poly = jnp.einsum('iokt,fkg->tifog', wt, onehot).reshape(
        KT, C_IN * F_IN, C_OUT * F_OUT)
    b_poly = jnp.repeat(bias, F_OUT).reshape(1, C_OUT * F_OUT)

    # --- activation layout: NCHW [B,C,F,T] -> [B, T_EXT, C*F] (one fused copy) ---
    xt = jnp.transpose(x, (0, 3, 1, 2))                             # [B, T, C, F]
    xt = jnp.pad(xt, ((0, 0), (0, T_EXT - T_IN), (0, 0), (0, 0)))   # look-ahead zero frame
    x_btcf = xt.reshape(B, T_EXT, C_IN * F_IN)

    out2d = pl.pallas_call(
        _deconv_kernel,
        out_shape=jax.ShapeDtypeStruct((B * T_OUT, C_OUT * F_OUT), x.dtype),
        in_specs=[
            pl.BlockSpec((B, T_EXT, C_IN * F_IN), lambda: (0, 0, 0)),
            pl.BlockSpec((KT, C_IN * F_IN, C_OUT * F_OUT), lambda: (0, 0, 0)),
            pl.BlockSpec((1, C_OUT * F_OUT), lambda: (0, 0)),
        ],
        out_specs=pl.BlockSpec((B * T_OUT, C_OUT * F_OUT), lambda: (0, 0)),
    )(x_btcf, w_poly, b_poly)

    # rows = (b, to), lanes = (co, fo)  ->  PyTorch NCHW [B, C_out, F_OUT, T_OUT]
    return jnp.transpose(out2d.reshape(B, T_OUT, C_OUT, F_OUT), (0, 2, 3, 1))


def reference(x, wt, bias):
    """Pure-JAX reference matching nn.ConvTranspose2d + Chomp2d('deconv')."""
    w_conv = jnp.transpose(jnp.flip(wt, axis=(2, 3)), (1, 0, 2, 3))  # [C_out, C_in, kF, kT]
    y = jax.lax.conv_general_dilated(
        x, w_conv, window_strides=(1, 1),
        padding=[(LO_F, HI_F), (LO_T, HI_T)],
        lhs_dilation=(S_F, S_T), rhs_dilation=(DIL, DIL),
        dimension_numbers=('NCHW', 'OIHW', 'NCHW'))
    y = y + bias[None, :, None, None]
    return y[:, :, :, CHOMP:]


if __name__ == "__main__":
    key = jax.random.PRNGKey(0)
    kx, kw, kb = jax.random.split(key, 3)
    x = jax.random.normal(kx, (B, C_IN, F_IN, T_IN), jnp.float32)
    # ConvTranspose2d weight layout is [C_in, C_out, kF, kT]
    wt = jax.random.normal(kw, (C_IN, C_OUT, KF, KT), jnp.float32) * 0.1
    bias = jax.random.normal(kb, (C_OUT,), jnp.float32) * 0.1

    out = jax.block_until_ready(semi_causal_conv_transpose(x, wt, bias))
    ref = jax.block_until_ready(reference(x, wt, bias))

    assert out.shape == (B, C_OUT, F_OUT, T_OUT), out.shape
    err = float(jnp.max(jnp.abs(out - ref)))
    if err > 1e-4:
        raise SystemExit("mismatch: max abs err = %e" % err)
    print("KERNEL_OK")
</pallas_src>

<mosaic_0001>
module attributes {stable_mosaic.version = 11 : i64} {
  func.func @_deconv_kernel(%arg0: memref<2x9x64xf32, #tpu.memory_space<vmem>>, %arg1: memref<2x64x128xf32, #tpu.memory_space<vmem>>, %arg2: memref<1x128xf32, #tpu.memory_space<vmem>>, %arg3: memref<16x128xf32, #tpu.memory_space<vmem>>) attributes {dimension_semantics = [], scalar_prefetch = 0 : i64, scratch_operands = 0 : i64, tpu.core_type = #tpu.core_type<tc>} {
    %c0 = arith.constant 0 : index
    %c1 = arith.constant 1 : index
    %c0_0 = arith.constant 0 : index
    %0 = vector.load %arg0[%c0, %c1, %c0_0] : memref<2x9x64xf32, #tpu.memory_space<vmem>>, vector<2x8x64xf32>
    %1 = vector.shape_cast %0 : vector<2x8x64xf32> to vector<16x64xf32>
    %c0_1 = arith.constant 0 : index
    %c0_2 = arith.constant 0 : index
    %c0_3 = arith.constant 0 : index
    %2 = vector.load %arg1[%c0_1, %c0_2, %c0_3] : memref<2x64x128xf32, #tpu.memory_space<vmem>>, vector<1x64x128xf32>
    %3 = vector.shape_cast %2 : vector<1x64x128xf32> to vector<64x128xf32>
    %cst = arith.constant dense<0.000000e+00> : vector<16x128xf32>
    %4 = tpu.matmul %1, %3, %cst {dimension_numbers = #tpu.dot_dimension_numbers<[1], [0], [0], [1], [0, 0, 1, 1], [], []>} : vector<16x64xf32>, vector<64x128xf32>, vector<16x128xf32> -> vector<16x128xf32>
    %c0_4 = arith.constant 0 : index
    %c0_5 = arith.constant 0 : index
    %c0_6 = arith.constant 0 : index
    %5 = vector.load %arg0[%c0_4, %c0_5, %c0_6] : memref<2x9x64xf32, #tpu.memory_space<vmem>>, vector<2x8x64xf32>
    %6 = vector.shape_cast %5 : vector<2x8x64xf32> to vector<16x64xf32>
    %c1_7 = arith.constant 1 : index
    %c0_8 = arith.constant 0 : index
    %c0_9 = arith.constant 0 : index
    %7 = vector.load %arg1[%c1_7, %c0_8, %c0_9] : memref<2x64x128xf32, #tpu.memory_space<vmem>>, vector<1x64x128xf32>
    %8 = vector.shape_cast %7 : vector<1x64x128xf32> to vector<64x128xf32>
    %cst_10 = arith.constant dense<0.000000e+00> : vector<16x128xf32>
    %9 = tpu.matmul %6, %8, %cst_10 {dimension_numbers = #tpu.dot_dimension_numbers<[1], [0], [0], [1], [0, 0, 1, 1], [], []>} : vector<16x64xf32>, vector<64x128xf32>, vector<16x128xf32> -> vector<16x128xf32>
    %10 = arith.addf %4, %9 : vector<16x128xf32>
    %c0_11 = arith.constant 0 : index
    %c0_12 = arith.constant 0 : index
    %11 = vector.load %arg2[%c0_11, %c0_12] : memref<1x128xf32, #tpu.memory_space<vmem>>, vector<1x128xf32>
    %12 = vector.broadcast %11 : vector<1x128xf32> to vector<16x128xf32>
    %13 = arith.addf %10, %12 : vector<16x128xf32>
    %c0_13 = arith.constant 0 : index
    %c0_14 = arith.constant 0 : index
    %14 = vector.load %arg3[%c0_13, %c0_14] : memref<16x128xf32, #tpu.memory_space<vmem>>, vector<16x128xf32>
    tpu.vector_store %arg3[%c0_13, %c0_14], %13 {strides = array<i32>} : memref<16x128xf32, #tpu.memory_space<vmem>>, vector<16x128xf32>,
    return
  }
}

</mosaic_0001>

<bundles_post_ra>
// kernel: semi_causal_conv_transpose.1
= control target key start
LH: loop header
LB: loop body
LE: loop exit
PB: predicated region body
PF: predicated region fallthrough
CT: control target
= control target key end

     0   :  { %vm35_vm0 = vcmask 523264   ;;  %s373_s1 = inlined_call_operand.vmem [shape: f32[2,64,128], index: 1, kind: input, shape index: {}]   ;;  %s374_s0 = inlined_call_operand.vmem [shape: f32[2,9,64], index: 0, kind: input, shape index: {}]   ;;  %s375_s2 = inlined_call_operand.vmem [shape: f32[1,128], index: 2, kind: input, shape index: {}]   ;;  %s376_s3 = inlined_call_operand.vmem [shape: f32[16,128], index: 3, kind: output, shape index: {}]  }
   0x1   :  { %v220_v0 = vld [vmem:[%s373_s1 + $0x78] sm:$0xff]  ;;  %v219_v2 = vld [vmem:[%s373_s1 + $0x70] sm:$0xff]  ;;  %v218_v4 = vld [vmem:[%s373_s1 + $0x68] sm:$0xff] }
   0x2   :  { %v23_v1 = vld [vmem:[%s373_s1 + $0x38] sm:$0xff]  ;;  %246 = vmatprep.subr.mxu0 %v220_v0  ;;  %v22_v3 = vld [vmem:[%s373_s1 + $0x30] sm:$0xff]  ;;  %v21_v5 = vld [vmem:[%s373_s1 + $0x28] sm:$0xff] }
   0x3   :  { %265 = vmatprep.subr.mxu1 %v23_v1  ;;  %247 = vmatpush3.msra.mxu0 %v220_v0  ;;  %v217_v6 = vld [vmem:[%s373_s1 + $0x60] sm:$0xff]  ;;  %v216_v8 = vld [vmem:[%s373_s1 + $0x58] sm:$0xff]  ;;  %v215_v10 = vld [vmem:[%s373_s1 + $0x50] sm:$0xff] }
   0x4   :  { %266 = vmatpush3.msra.mxu1 %v23_v1  ;;  %248 = vmatprep.subr.mxu0 %v219_v2  ;;  %v20_v7 = vld [vmem:[%s373_s1 + $0x20] sm:$0xff]  ;;  %v19_v9 = vld [vmem:[%s373_s1 + $0x18] sm:$0xff]  ;;  %v18_v11 = vld [vmem:[%s373_s1 + $0x10] sm:$0xff] }
   0x5   :  { %267 = vmatprep.subr.mxu1 %v22_v3  ;;  %249 = vmatpush3.msra.mxu0 %v219_v2  ;;  %v214_v12 = vld [vmem:[%s373_s1 + $0x48] sm:$0xff]  ;;  %v213_v14 = vld [vmem:[%s373_s1 + $0x40] sm:$0xff]  ;;  %v25_v18 = vld [vmem:[%s374_s0 + $0x10] sm:$0xff] }
   0x6   :  { %268 = vmatpush3.msra.mxu1 %v22_v3  ;;  %250 = vmatprep.subr.mxu0 %v218_v4  ;;  %v17_v13 = vld [vmem:[%s373_s1 + $0x8] sm:$0xff]  ;;  %v16_v15 = vld [vmem:[%s373_s1] sm:$0xff]  ;;  %v15_v19 = vld [vmem:[%s374_s0 + $0x11] sm:$0xff] }
   0x7   :  { %269 = vmatprep.subr.mxu1 %v21_v5  ;;  %251 = vmatpush3.msra.mxu0 %v218_v4  ;;  %v24_v16 = vld [vmem:[%s374_s0] sm:$0xff] }
   0x8   :  { %270 = vmatpush3.msra.mxu1 %v21_v5  ;;  %252 = vmatprep.subr.mxu0 %v217_v6  ;;  %v14_v17 = vld [vmem:[%s374_s0 + $0x1] sm:$0xff]  ;;  %v225_v22 = vld [vmem:[%s375_s2] ss:$0 sm:$0xff] }
   0x9   :  { %271 = vmatprep.subr.mxu1 %v20_v7  ;;  %253 = vmatpush3.msra.mxu0 %v217_v6 }
   0xa   :  { %272 = vmatpush3.msra.mxu1 %v20_v7  ;;  %254 = vmatprep.subr.mxu0 %v216_v8 }
   0xb   :  { %273 = vmatprep.subr.mxu1 %v19_v9  ;;  %255 = vmatpush3.msra.mxu0 %v216_v8 }
   0xc   :  { %274 = vmatpush3.msra.mxu1 %v19_v9  ;;  %256 = vmatprep.subr.mxu0 %v215_v10 }
   0xd   :  { %275 = vmatprep.subr.mxu1 %v18_v11  ;;  %257 = vmatpush3.msra.mxu0 %v215_v10 }
   0xe   :  { %276 = vmatpush3.msra.mxu1 %v18_v11  ;;  %258 = vmatprep.subr.mxu0 %v214_v12 }
   0xf   :  { %277 = vmatprep.subr.mxu1 %v17_v13  ;;  %259 = vmatpush3.msra.mxu0 %v214_v12 }
  0x10   :  { %278 = vmatpush3.msra.mxu1 %v17_v13  ;;  %260 = vmatprep.subr.mxu0 %v213_v14 }
  0x11   :  { %279 = vmatprep.subr.mxu1 %v16_v15  ;;  %261 = vmatpush3.msra.mxu0 %v213_v14 }
  0x12   :  { %262 = vmatprep.mubr.msk.f32.mxu0 %vm35_vm0, %v24_v16  ;;  %280 = vmatpush3.msra.mxu1 %v16_v15 }
  0x13   :  { %281 = vmatprep.mubr.msk.f32.mxu1 %vm35_vm0, %v14_v17  ;;  %263 = vmatmul.mubr.msk.f32.vlgmr.msra.gmra.mxu0 %vm35_vm0, %v25_v18 }
  0x14   :  { %282 = vmatmul.mubr.msk.f32.vlgmr.msra.gmra.mxu1 %vm35_vm0, %v15_v19 }
  0xd3   :  { %v264_v20 = vpop.f32.mrf.mxu0 }
  0xd4   :  { %v283_v21 = vpop.f32.mrf.mxu1 }
  0xd5   :  { %v195_v23 = vadd.f32 %v283_v21, %v264_v20  ;;  %v108_v24 = vpop.f32.mrf.mxu0 }
  0xd6   :  { %v189_v25 = vpop.f32.mrf.mxu1 }
  0xd7   :  { %v206_v26 = vadd.f32 %v225_v22, %v195_v23  ;;  %v190_v27 = vadd.f32 %v189_v25, %v108_v24 }
  0xd9   :  { %208 = vst [vmem:[%s376_s3 + $0x8] sm:$0xff] %v206_v26  ;;  %v205_v28 = vadd.f32 %v225_v22, %v190_v27 }
  0xdb   :  { %207 = vst [vmem:[%s376_s3] sm:$0xff] %v205_v28 }

</bundles_post_ra>
